<compile_context>
chip_gen: v7x
topology: tpu7x:2x2x1
jax: 0.10.0
libtpu: 0.0.40
codegen_flags: <defaults>
</compile_context>

<pallas_src>
import functools
import math

import jax
import jax.numpy as jnp
from jax.experimental import pallas as pl
from jax.experimental.pallas import tpu as pltpu

_MIB = 1024 * 1024
_XLA_FALLBACK_BYTES = 1 * _MIB   # below this, plain XLA add wins (fixed pallas cost)


def _sublane_multiple(dtype) -> int:
    # f32 -> 8, bf16 -> 16, int8/fp8 -> 32 (sub-32-bit dtypes pack along sublanes).
    return max(8, 32 // jnp.dtype(dtype).itemsize)


@functools.lru_cache(maxsize=1)
def _budgets():
    """(block_bytes, vmem_limit_bytes) chosen per TPU generation."""
    phys = 0
    try:
        info = pltpu.get_tpu_info()
        phys = int(getattr(info, "vmem_capacity_bytes", 0) or 0)
    except Exception:
        phys = 0
    if phys >= 96 * _MIB:          # v5e / v6e class: 128 MiB physical VMEM
        return 10 * _MIB, 64 * _MIB
    if phys > 0:                   # v7x class: 64 MiB physical VMEM
        return 8 * _MIB, 44 * _MIB
    return 6 * _MIB, 40 * _MIB     # unknown backend: conservative, safe everywhere


def _add_bias_kernel(x_ref, b_ref, o_ref):
    # Pure VPU broadcast-add; bias block is (1, TL) (row bias) or (TR, 1) (col bias).
    o_ref[...] = (x_ref[...] + b_ref[...]).astype(o_ref.dtype)


def _bcast_add_2d(x2, b2, out_dtype, donate_x=False):
    """x2: (R, L); b2: (1, L) row-bias or (R, 1) col-bias. Tiled, pipelined add."""
    R, L = x2.shape
    row_bias = b2.shape[0] == 1
    col_bias = not row_bias

    is_x = jnp.dtype(x2.dtype).itemsize
    is_o = jnp.dtype(out_dtype).itemsize
    is_b = jnp.dtype(b2.dtype).itemsize
    sub = max(_sublane_multiple(x2.dtype),
              _sublane_multiple(b2.dtype),
              _sublane_multiple(out_dtype))

    block_bytes, vmem_limit = _budgets()

    # Lane tile: multiple of 128 when possible, capped at a 128-aligned budget so
    # even a minimum-height (sub-row) block stays within the block budget.  For
    # L % 128 != 0, cap as well (masked tail block) so wide unaligned last dims
    # cannot blow VMEM.
    lane_budget = max(128, (block_bytes // (sub * max(is_x, is_o))) // 128 * 128)
    if L % 128 == 0:
        tile_l = min(L, lane_budget)
    else:
        tile_l = L if L <= lane_budget else lane_budget

    # Row tile: explicit VMEM accounting.  Double-buffered footprint is roughly
    #   2 * tile_r * [padded_l*(is_x+is_o) + (128*is_b if col-bias)]  (+ tiny row bias)
    # Keep it under ~4*block_bytes and under ~75% of the scoped VMEM limit.
    padded_l = ((tile_l + 127) // 128) * 128
    per_row_bytes = padded_l * (is_x + is_o)
    if col_bias:
        per_row_bytes += 128 * is_b           # (tile_r, 1) bias pads to (tile_r, 128)
    target_total = min(4 * block_bytes, (vmem_limit * 3) // 4)
    rows_budget = max(1, target_total // (2 * per_row_bytes))
    tile_r = max(sub, (rows_budget // sub) * sub)

    if R > 2 * sub:
        # Guarantee >= 2 row blocks so both v7x TensorCores get work
        # (harmless on single-TC chips).
        half_r = (((R + 1) // 2) + sub - 1) // sub * sub
        tile_r = min(tile_r, half_r)
    elif tile_r >= R:
        tile_r = R  # full extent is always a legal block dim

    grid = (pl.cdiv(R, tile_r), pl.cdiv(L, tile_l))

    if row_bias:
        b_spec = pl.BlockSpec((1, tile_l), lambda i, j: (0, j))
    else:
        b_spec = pl.BlockSpec((tile_r, 1), lambda i, j: (i, 0))

    io_aliases = {}
    if donate_x and jnp.dtype(x2.dtype) == jnp.dtype(out_dtype):
        io_aliases = {0: 0}   # alias x buffer to the output (caller must allow donation)

    return pl.pallas_call(
        _add_bias_kernel,
        out_shape=jax.ShapeDtypeStruct((R, L), out_dtype),
        grid=grid,
        in_specs=[pl.BlockSpec((tile_r, tile_l), lambda i, j: (i, j)), b_spec],
        out_specs=pl.BlockSpec((tile_r, tile_l), lambda i, j: (i, j)),
        input_output_aliases=io_aliases,
        compiler_params=pltpu.CompilerParams(
            dimension_semantics=("parallel", "parallel"),
            vmem_limit_bytes=vmem_limit,
        ),
    )(x2, b2)


def _rowbias_add(x2, bias_row, out_dtype, donate_x=False):
    """(R, L) + (1, L).  If L is not lane-aligned, lcm-fold rows into the lane axis
    so output stores are full-lane; non-divisible row counts split into a folded
    bulk plus a tiny XLA tail."""
    R, L = x2.shape
    if L % 128 == 0:
        return _bcast_add_2d(x2, bias_row, out_dtype, donate_x)

    k = math.lcm(L, 128) // L          # rows folded per lane-dense super-row
    Rb = (R // k) * k
    if Rb == 0:
        # Too few rows to fold; array is tiny, lane-sparse tiled kernel is fine.
        return _bcast_add_2d(x2, bias_row, out_dtype, donate_x)

    bias_f = jnp.tile(bias_row, (1, k))                      # (1, k*L)
    if Rb == R:
        y = _bcast_add_2d(x2.reshape(R // k, k * L), bias_f, out_dtype, donate_x)
        return y.reshape(R, L)

    # Bulk rows go through the lane-dense folded kernel; the (< k) tail rows are
    # tiny and handled by a plain XLA broadcast add.  The concat costs one extra
    # copy but avoids masked (lane-sparse) stores over the whole array.
    bulk = _bcast_add_2d(x2[:Rb].reshape(Rb // k, k * L), bias_f, out_dtype, False)
    bulk = bulk.reshape(Rb, L)
    tail = (x2[Rb:] + bias_row).astype(out_dtype)
    return jnp.concatenate([bulk, tail], axis=0)


def add_bias(x, bias_param, *, min_pallas_bytes=_XLA_FALLBACK_BYTES, donate_x=False):
    """AddBias forward. `bias_param` has shape (C, 1), mirroring nn.Parameter(bias.unsqueeze(1))."""
    C = bias_param.shape[0]
    bias_vec = bias_param.reshape(C)
    out_dtype = jnp.result_type(x.dtype, bias_vec.dtype)
    x_bytes = x.size * jnp.dtype(x.dtype).itemsize

    if x.ndim == 2:
        N, Cx = x.shape
        assert Cx == C
        bias_row = bias_vec.reshape(1, C)
        if x_bytes < min_pallas_bytes:
            return (x + bias_row).astype(out_dtype)      # XLA fuses tiny adds for free
        return _rowbias_add(x, bias_row, out_dtype, donate_x)

    elif x.ndim == 4:
        N, Cx, H, W = x.shape
        assert Cx == C
        if x_bytes < min_pallas_bytes:
            return (x + bias_vec.reshape(1, C, 1, 1)).astype(out_dtype)
        HW = H * W
        if HW % 128 == 0:
            # Lanes = dense spatial axis, sublanes = (n, c) rows; per-row column bias.
            x2 = x.reshape(N * C, HW)
            b_col = jnp.tile(bias_vec, (N,)).reshape(N * C, 1)   # row n*C+c -> bias[c]
            y2 = _bcast_add_2d(x2, b_col, out_dtype, donate_x)
            return y2.reshape(N, C, H, W)
        # Unaligned HW (e.g. 7x7, 14x14): route through the lane-dense row-bias
        # fold on (N, C*HW) with bias repeated per spatial position.
        x2 = x.reshape(N, C * HW)
        b_row = jnp.repeat(bias_vec, HW).reshape(1, C * HW)
        y2 = _rowbias_add(x2, b_row, out_dtype, donate_x)
        return y2.reshape(N, C, H, W)

    else:
        raise ValueError(f"AddBias only supports 2-D or 4-D inputs, got ndim={x.ndim}")


if __name__ == "__main__":
    key = jax.random.PRNGKey(0)
    k1, k2, k3, k4, k5, k6 = jax.random.split(key, 6)

    C = 4
    # Deterministic "parameter": bias vector of shape (C,), stored as (C, 1)
    # exactly like nn.Parameter(bias.unsqueeze(1)).
    bias_vec = jax.random.normal(k1, (C,), dtype=jnp.float32)
    bias_param = bias_vec.reshape(C, 1)

    ok = True

    # 4-D path, HW % 128 == 0 (column-bias layout).  Force the Pallas path.
    x4 = jax.random.normal(k2, (2, C, 16, 16), dtype=jnp.float32)
    y4 = jax.block_until_ready(add_bias(x4, bias_param, min_pallas_bytes=0))
    ok &= bool(jnp.allclose(y4, x4 + bias_vec.reshape(1, C, 1, 1), atol=1e-6, rtol=1e-6))
    ok &= (y4.shape == x4.shape and y4.dtype == x4.dtype)

    # 4-D path, HW not a multiple of 128 (7x7 feature map -> row-bias route).
    x4b = jax.random.normal(k3, (2, C, 7, 7), dtype=jnp.float32)
    y4b = jax.block_until_ready(add_bias(x4b, bias_param, min_pallas_bytes=0))
    ok &= bool(jnp.allclose(y4b, x4b + bias_vec.reshape(1, C, 1, 1), atol=1e-6, rtol=1e-6))

    # 2-D path, small N (plain tiled fallback; too few rows to fold).
    x2 = jax.random.normal(k4, (8, C), dtype=jnp.float32)
    y2 = jax.block_until_ready(add_bias(x2, bias_param, min_pallas_bytes=0))
    ok &= bool(jnp.allclose(y2, x2 + bias_vec.reshape(1, C), atol=1e-6, rtol=1e-6))

    # 2-D path, N divisible by the lane-fold factor (fully folded, lane-dense).
    x2f = jax.random.normal(k5, (64, C), dtype=jnp.float32)
    y2f = jax.block_until_ready(add_bias(x2f, bias_param, min_pallas_bytes=0))
    ok &= bool(jnp.allclose(y2f, x2f + bias_vec.reshape(1, C), atol=1e-6, rtol=1e-6))

    # 2-D path, N NOT divisible by the fold factor (folded bulk + tiny XLA tail).
    x2t = jax.random.normal(k6, (70, C), dtype=jnp.float32)
    y2t = jax.block_until_ready(add_bias(x2t, bias_param, min_pallas_bytes=0))
    ok &= bool(jnp.allclose(y2t, x2t + bias_vec.reshape(1, C), atol=1e-6, rtol=1e-6))

    # Default dispatch: tiny input takes the XLA fast path (semantics identical).
    y4d = jax.block_until_ready(add_bias(x4, bias_param))
    ok &= bool(jnp.allclose(y4d, x4 + bias_vec.reshape(1, C, 1, 1), atol=1e-6, rtol=1e-6))

    assert ok
    print("KERNEL_OK")
</pallas_src>

<mosaic_0001>
module attributes {stable_mosaic.version = 11 : i64} {
  func.func @_add_bias_kernel(%arg0: i32, %arg1: i32, %arg2: memref<8x256xf32, #tpu.memory_space<vmem>>, %arg3: memref<8x1xf32, #tpu.memory_space<vmem>>, %arg4: memref<8x256xf32, #tpu.memory_space<vmem>>) attributes {dimension_semantics = [#tpu.dimension_semantics<parallel>, #tpu.dimension_semantics<parallel>], iteration_bounds = array<i64: 1, 1>, scalar_prefetch = 0 : i64, scratch_operands = 0 : i64, tpu.core_type = #tpu.core_type<tc>, window_params = [{transform_indices = @transform_0, window_bounds = array<i64: 8, 256>}, {transform_indices = @transform_1, window_bounds = array<i64: 8, 1>}, {transform_indices = @transform_2, window_bounds = array<i64: 8, 256>}]} {
    %c0 = arith.constant 0 : index
    %c0_0 = arith.constant 0 : index
    %0 = vector.load %arg2[%c0, %c0_0] : memref<8x256xf32, #tpu.memory_space<vmem>>, vector<8x256xf32>
    %c0_1 = arith.constant 0 : index
    %c0_2 = arith.constant 0 : index
    %1 = vector.load %arg3[%c0_1, %c0_2] : memref<8x1xf32, #tpu.memory_space<vmem>>, vector<8x1xf32>
    %2 = vector.broadcast %1 : vector<8x1xf32> to vector<8x256xf32>
    %3 = arith.addf %0, %2 : vector<8x256xf32>
    %c0_3 = arith.constant 0 : index
    %c0_4 = arith.constant 0 : index
    %4 = vector.load %arg4[%c0_3, %c0_4] : memref<8x256xf32, #tpu.memory_space<vmem>>, vector<8x256xf32>
    tpu.vector_store %arg4[%c0_3, %c0_4], %3 {strides = array<i32>} : memref<8x256xf32, #tpu.memory_space<vmem>>, vector<8x256xf32>,
    return
  }
  func.func @transform_0(%arg0: i32, %arg1: i32) -> (i32, i32) {
    %c0_i32 = arith.constant 0 : i32
    return %arg0, %arg1 : i32, i32
  }
  func.func @transform_1(%arg0: i32, %arg1: i32) -> (i32, i32) {
    %c0_i32 = arith.constant 0 : i32
    %c0_i32_0 = arith.constant 0 : i32
    return %arg0, %c0_i32 : i32, i32
  }
  func.func @transform_2(%arg0: i32, %arg1: i32) -> (i32, i32) {
    %c0_i32 = arith.constant 0 : i32
    return %arg0, %arg1 : i32, i32
  }
}

</mosaic_0001>

<bundles_post_ra>
// kernel: tpu_custom_call.1
= control target key start
LH: loop header
LB: loop body
LE: loop exit
PB: predicated region body
PF: predicated region fallthrough
CT: control target
= control target key end

     0   :  { %7 = vsyncpa [#allocation3], 0  ;;  %s148_s0 = inlined_call_operand.hbm [shape: f32[8,256], index: 0, kind: input, shape index: {}]   ;;  %s149_s1 = inlined_call_operand.vmem [shape: f32[8,1], index: 1, kind: input, shape index: {}]   ;;  %s150_s2 = inlined_call_operand.hbm [shape: f32[8,256], index: 2, kind: output, shape index: {}]  }
   0x1   :  { %8 = vsyncpa [#allocation4], 0  ;;  %s103_s9 = smov [#allocation2]   ;;  %s55_s13 = scalar_lea.hbm %s148_s0, 256 }
   0x2   :  { %s15_s10 = sshll.u32 %s103_s9, 4  ;;  %p56_p0 = scmp.ne.s32.totalorder %s148_s0, %s55_s13  ;;  %s16_s10 = int_to_ptr.vmem [resolvable:$true] %s15_s10 }
   0x3   :  { %p59_p1 = scmp.lt.u32.totalorder %s55_s13, %s148_s0 }
   0x5   :  { %p61_p2 = pnand %p59_p1, %p56_p0 }
   0x7   :  { %64 = shalt.err (!%p61_p2)
}
   0x8   :  { %s65_s18 = scalar_lea.vmem %s16_s10, 256  ;;  %p70_p4 = scmp.lt.s32.totalorder %s16_s10, %s16_s10 }
   0x9   :  { %p66_p3 = scmp.ne.s32.totalorder %s16_s10, %s65_s18  ;;  %p71_p5 = scmp.lt.s32.totalorder %s65_s18, %s65_s18 }
   0xb   :  { %p72_p6 = por %p71_p5, %p70_p4 }
   0xd   :  { %p73_p7 = pnand %p72_p6, %p66_p3 }
   0xf   :  { %76 = shalt.err (!%p73_p7)
}
  0x10   :  { %18 = dma.hbm_to_vmem [thread:$0]  %s148_s0, 256, %s16_s10, [#allocation3]  }
  0x11   :  { %99 = dma.done.wait [#allocation3], 256  }
  0x12   :  { %100 = vsyncadd [#allocation3], 4294967040  ;;  %v104_v0 = vmov 0   ;;  %v26_v1 = vld [vmem:[%s149_s1] sm:$0xff]  ;;  %v25_v3 = vld [vmem:[#allocation2 + $0x8] sm:$0xff]  ;;  %s105_s23 = smov [#allocation5]  }
  0x13   :  { %54 = vset.pattern.permute.xlu0 %v104_v0  ;;  %v24_v2 = vld [vmem:[#allocation2] sm:$0xff]  ;;  %s42_s24 = sshll.u32 %s105_s23, 4  ;;  %s43_s24 = int_to_ptr.vmem [resolvable:$true] %s42_s24 }
  0x14   :  { %29 = vperm.xlu0 %54, %v26_v1   ;;  %s77_s0 = scalar_lea.vmem %s43_s24, 256  ;;  %p82_p9 = scmp.lt.s32.totalorder %s43_s24, %s43_s24 }
  0x15   :  { %p78_p8 = scmp.ne.s32.totalorder %s43_s24, %s77_s0  ;;  %p83_p10 = scmp.lt.s32.totalorder %s77_s0, %s77_s0 }
  0x17   :  { %p84_p11 = por %p83_p10, %p82_p9 }
  0x19   :  { %p85_p12 = pnand %p84_p11, %p78_p8 }
  0x93   :  { %v30_v4 = vpop.permute.xlu0 %29 }
  0x94   :  { %v32_v5 = vadd.f32 %v30_v4, %v24_v2  ;;  %v33_v6 = vadd.f32 %v30_v4, %v25_v3 }
  0x96   :  { %34 = vst [vmem:[#allocation5] sm:$0xff] %v32_v5  ;;  %35 = vst [vmem:[#allocation5 + $0x8] sm:$0xff] %v33_v6 }
  0x97   :  { %88 = shalt.err (!%p85_p12)
}
  0x98   :  { %s89_s26 = scalar_lea.hbm %s150_s2, 256 }
  0x99   :  { %p90_p13 = scmp.ne.s32.totalorder %s150_s2, %s89_s26  ;;  %p93_p0 = scmp.lt.u32.totalorder %s89_s26, %s150_s2 }
  0x9b   :  { %p95_p1 = pnand %p93_p0, %p90_p13 }
  0x9d   :  { %98 = shalt.err (!%p95_p1)
}
  0x9e   :  { %45 = dma.vmem_to_hbm [thread:$0]  %s43_s24, 256, %s150_s2, [#allocation4]  }
  0x9f   :  { %101 = dma.done.wait [#allocation4], 256  }
  0xa0   :  { %102 = vsyncadd [#allocation4], 4294967040 }
  0xa1   :  { %49 = vsyncpa [#allocation3], 1 }
  0xa2   :  { %50 = vsyncpa [#allocation4], 1 }

</bundles_post_ra>
